<compile_context>
chip_gen: v7x
topology: tpu7x:2x2x1
jax: 0.10.0
libtpu: 0.0.40
codegen_flags: <defaults>
</compile_context>

<pallas_src>
import functools

import jax
import jax.numpy as jnp
from jax.experimental import pallas as pl
from jax.experimental.pallas import tpu as pltpu


# ---- config mirroring the DictConfig the module expects ---------------------
FEATURE_DIM = 16
CONTEXT_ENCODER_ENABLED = True
INPUT_SIZE = FEATURE_DIM * (2 if CONTEXT_ENCODER_ENABLED else 1)   # 32
# classifier.layers = [{out_size: 64}, {in_size: 64, out_size: 48}, {in_size: 48}]
H1 = 64
H2 = 48
NUM_CLASSES = 8

_MAX_TM = 4096          # large batch tile; a few MiB of VMEM even with lane padding
_SUBLANE = 16


def _round_up(x, m):
    return ((x + m - 1) // m) * m


def _device_kind():
    try:
        return jax.devices()[0].device_kind.lower()
    except Exception:
        return ""


def _has_bf16_vpu():
    # v6e / v7x have a bf16-native VPU; v5e (and older) do not.
    k = _device_kind()
    return ("v6" in k) or ("v7" in k)


def _num_tensorcores():
    # v7x exposes 2 TensorCores per chip; v5e/v6e have 1.
    return 2 if "v7" in _device_kind() else 1


def _choose_tm(batch, num_tc):
    batch = max(int(batch), 1)
    if num_tc <= 1:
        # Single TensorCore: one grid step whenever the batch fits the tile;
        # splitting only adds per-step overhead on 1-TC chips.
        return min(_MAX_TM, _round_up(batch, _SUBLANE))
    # 2 TensorCores (v7x): want >= 2 grid steps and an even step count so both
    # cores get equal work (avoids tail imbalance at small odd step counts).
    tm = min(_MAX_TM, max(_SUBLANE, _round_up(pl.cdiv(batch, 2), _SUBLANE)))
    steps = pl.cdiv(batch, tm)
    if steps > 2 and steps % 2 == 1:
        tm = max(_SUBLANE, _round_up(pl.cdiv(batch, steps + 1), _SUBLANE))
    return tm


def mlp_kernel(z_ref, w1_ref, b1_ref, w2_ref, b2_ref, w3_ref, b3_ref, o_ref,
               *, acc_dtype):
    """Entire MLP hot path (3 matmuls + biases + ReLUs) on one batch tile.

    z arrives as f32 straight from HBM (no wrapper-side convert pass); the bf16
    cast for the MXU happens in-VMEM.  MXU accumulation is f32; the epilogue
    (bias add / ReLU / inter-layer activations) runs in `acc_dtype` (bf16 on
    v6e/v7x, f32 on v5e).  Final bias add and output store are f32."""
    x = z_ref[...].astype(jnp.bfloat16)
    h = jnp.dot(x, w1_ref[...], preferred_element_type=jnp.float32)
    h = jnp.maximum(h.astype(acc_dtype) + b1_ref[...], 0.0)
    h = jnp.dot(h.astype(jnp.bfloat16), w2_ref[...],
                preferred_element_type=jnp.float32)
    h = jnp.maximum(h.astype(acc_dtype) + b2_ref[...], 0.0)
    o = jnp.dot(h.astype(jnp.bfloat16), w3_ref[...],
                preferred_element_type=jnp.float32)
    o_ref[...] = (o + b3_ref[...]).astype(o_ref.dtype)


@functools.partial(jax.jit, static_argnames=("tm", "acc_dtype", "out_dtype"))
def _forward_impl(z, w1, b1, w2, b2, w3, b3, *, tm, acc_dtype, out_dtype):
    B, in_size = z.shape
    h1 = w1.shape[1]
    h2 = w2.shape[1]
    nc = w3.shape[1]
    grid = (pl.cdiv(B, tm),)      # ragged last tile handled by Pallas masking

    # Weights are tiny (a few KiB) and grid-resident -> cast once to bf16.
    # b1/b2 in the epilogue dtype; b3 stays f32 for the final add.
    w1b = w1.astype(jnp.bfloat16)
    w2b = w2.astype(jnp.bfloat16)
    w3b = w3.astype(jnp.bfloat16)
    b1e = b1.astype(acc_dtype)
    b2e = b2.astype(acc_dtype)
    b3f = b3.astype(jnp.float32)

    eb = jnp.dtype(acc_dtype).itemsize
    ob = jnp.dtype(out_dtype).itemsize
    flops = 2 * B * (in_size * h1 + h1 * h2 + h2 * nc)
    bytes_accessed = (B * in_size * 4 + B * nc * ob
                      + (in_size * h1 + h1 * h2 + h2 * nc) * 2
                      + (h1 + h2) * eb + nc * 4)

    kernel = functools.partial(mlp_kernel, acc_dtype=acc_dtype)
    return pl.pallas_call(
        kernel,
        out_shape=jax.ShapeDtypeStruct((B, nc), out_dtype),
        grid_spec=pltpu.PrefetchScalarGridSpec(
            num_scalar_prefetch=0,
            grid=grid,
            in_specs=[
                pl.BlockSpec((tm, in_size), lambda i: (i, 0)),   # z tile (f32)
                pl.BlockSpec((in_size, h1), lambda i: (0, 0)),   # W1 (bf16, resident)
                pl.BlockSpec((1, h1), lambda i: (0, 0)),         # b1 (epilogue dtype)
                pl.BlockSpec((h1, h2), lambda i: (0, 0)),        # W2
                pl.BlockSpec((1, h2), lambda i: (0, 0)),         # b2
                pl.BlockSpec((h2, nc), lambda i: (0, 0)),        # W3
                pl.BlockSpec((1, nc), lambda i: (0, 0)),         # b3 (f32)
            ],
            out_specs=pl.BlockSpec((tm, nc), lambda i: (i, 0)),
        ),
        compiler_params=pltpu.CompilerParams(
            dimension_semantics=("parallel",)),
        cost_estimate=pl.CostEstimate(
            flops=flops, transcendentals=0, bytes_accessed=bytes_accessed),
    )(z, w1b, b1e, w2b, b2e, w3b, b3f)


def classifier_forward(z, w1, b1, w2, b2, w3, b3, *, tm=None,
                       out_dtype=jnp.float32):
    """Classifier forward: z (B, 2*D) -> logits (B, num_classes)."""
    acc_dtype = jnp.bfloat16 if _has_bf16_vpu() else jnp.float32
    if tm is None:
        tm = _choose_tm(z.shape[0], _num_tensorcores())
    return _forward_impl(z, w1, b1, w2, b2, w3, b3, tm=int(tm),
                         acc_dtype=acc_dtype, out_dtype=out_dtype)


def init_linear(key, fan_in, fan_out):
    """Deterministic PyTorch-style uniform(-1/sqrt(fan_in), 1/sqrt(fan_in)) init.

    Returns W with shape (fan_in, fan_out) and b with shape (1, fan_out)."""
    kw, kb = jax.random.split(key)
    bound = 1.0 / jnp.sqrt(jnp.float32(fan_in))
    w = jax.random.uniform(kw, (fan_in, fan_out), jnp.float32, -bound, bound)
    b = jax.random.uniform(kb, (1, fan_out), jnp.float32, -bound, bound)
    return w, b


def reference_forward(z, w1, b1, w2, b2, w3, b3, acc_dtype=jnp.float32):
    """Pure-JAX reference emulating the same bf16-operand / f32-accumulate /
    acc_dtype-epilogue math as the kernel."""
    h = jnp.dot(z.astype(jnp.bfloat16), w1.astype(jnp.bfloat16),
                preferred_element_type=jnp.float32)
    h = jnp.maximum(h.astype(acc_dtype) + b1.astype(acc_dtype), 0.0)
    h = jnp.dot(h.astype(jnp.bfloat16), w2.astype(jnp.bfloat16),
                preferred_element_type=jnp.float32)
    h = jnp.maximum(h.astype(acc_dtype) + b2.astype(acc_dtype), 0.0)
    o = jnp.dot(h.astype(jnp.bfloat16), w3.astype(jnp.bfloat16),
                preferred_element_type=jnp.float32)
    return (o + b3).astype(jnp.float32)


if __name__ == "__main__":
    key = jax.random.PRNGKey(0)
    k_z, k1, k2, k3 = jax.random.split(key, 4)

    w1, b1 = init_linear(k1, INPUT_SIZE, H1)
    w2, b2 = init_linear(k2, H1, H2)
    w3, b3 = init_linear(k3, H2, NUM_CLASSES)

    acc_dtype = jnp.bfloat16 if _has_bf16_vpu() else jnp.float32

    # Batch that is NOT a multiple of the tile -> exercises the ragged (masked)
    # last tile with no jnp.pad and no output slice.
    B = 24
    z = jax.random.normal(k_z, (B, INPUT_SIZE), jnp.float32)
    out = jax.block_until_ready(classifier_forward(z, w1, b1, w2, b2, w3, b3))

    # Multi-step ragged grid path (3 tiles of 16 covering 40 rows).
    B2 = 40
    z2 = jax.random.normal(k_z, (B2, INPUT_SIZE), jnp.float32)
    out2 = jax.block_until_ready(
        classifier_forward(z2, w1, b1, w2, b2, w3, b3, tm=16))

    # Emulated-path reference (tight) + f32 reference (loose sanity).
    ref = reference_forward(z, w1, b1, w2, b2, w3, b3, acc_dtype)
    ref2 = reference_forward(z2, w1, b1, w2, b2, w3, b3, acc_dtype)
    ref_f32 = jnp.maximum(z @ w1 + b1, 0.0)
    ref_f32 = jnp.maximum(ref_f32 @ w2 + b2, 0.0)
    ref_f32 = ref_f32 @ w3 + b3

    assert out.shape == (B, NUM_CLASSES)
    assert out2.shape == (B2, NUM_CLASSES)
    assert jnp.allclose(out, ref, atol=1e-2, rtol=1e-2)
    assert jnp.allclose(out2, ref2, atol=1e-2, rtol=1e-2)
    assert jnp.allclose(out, ref_f32, atol=6e-2, rtol=6e-2)

    print("KERNEL_OK")
</pallas_src>

<mosaic_0001>
module attributes {stable_mosaic.version = 11 : i64} {
  func.func @mlp_kernel(%arg0: i32, %arg1: memref<32x32xf32, #tpu.memory_space<vmem>>, %arg2: memref<32x64xbf16, #tpu.memory_space<vmem>>, %arg3: memref<1x64xf32, #tpu.memory_space<vmem>>, %arg4: memref<64x48xbf16, #tpu.memory_space<vmem>>, %arg5: memref<1x48xf32, #tpu.memory_space<vmem>>, %arg6: memref<48x8xbf16, #tpu.memory_space<vmem>>, %arg7: memref<1x8xf32, #tpu.memory_space<vmem>>, %arg8: memref<32x8xf32, #tpu.memory_space<vmem>>) attributes {dimension_semantics = [#tpu.dimension_semantics<parallel>], iteration_bounds = array<i64: 1>, scalar_prefetch = 0 : i64, scratch_operands = 0 : i64, tpu.core_type = #tpu.core_type<tc>, window_params = [{transform_indices = @transform_0, window_bounds = array<i64: 32, 32>}, {pipeline_mode = #tpu.pipeline_mode<synchronous>, transform_indices = @transform_1, window_bounds = array<i64: 32, 64>}, {pipeline_mode = #tpu.pipeline_mode<synchronous>, transform_indices = @transform_2, window_bounds = array<i64: 1, 64>}, {pipeline_mode = #tpu.pipeline_mode<synchronous>, transform_indices = @transform_3, window_bounds = array<i64: 64, 48>}, {pipeline_mode = #tpu.pipeline_mode<synchronous>, transform_indices = @transform_4, window_bounds = array<i64: 1, 48>}, {pipeline_mode = #tpu.pipeline_mode<synchronous>, transform_indices = @transform_5, window_bounds = array<i64: 48, 8>}, {pipeline_mode = #tpu.pipeline_mode<synchronous>, transform_indices = @transform_6, window_bounds = array<i64: 1, 8>}, {transform_indices = @transform_7, window_bounds = array<i64: 32, 8>}]} {
    %c0 = arith.constant 0 : index
    %c0_0 = arith.constant 0 : index
    %0 = vector.load %arg1[%c0, %c0_0] : memref<32x32xf32, #tpu.memory_space<vmem>>, vector<32x32xf32>
    %1 = arith.truncf %0 : vector<32x32xf32> to vector<32x32xbf16>
    %c0_1 = arith.constant 0 : index
    %c0_2 = arith.constant 0 : index
    %2 = vector.load %arg2[%c0_1, %c0_2] : memref<32x64xbf16, #tpu.memory_space<vmem>>, vector<32x64xbf16>
    %cst = arith.constant dense<0.000000e+00> : vector<32x64xf32>
    %3 = tpu.matmul %1, %2, %cst {dimension_numbers = #tpu.dot_dimension_numbers<[1], [0], [0], [1], [0, 0, 1, 1], [], []>} : vector<32x32xbf16>, vector<32x64xbf16>, vector<32x64xf32> -> vector<32x64xf32>
    %c0_3 = arith.constant 0 : index
    %c0_4 = arith.constant 0 : index
    %4 = vector.load %arg3[%c0_3, %c0_4] : memref<1x64xf32, #tpu.memory_space<vmem>>, vector<1x64xf32>
    %5 = vector.broadcast %4 : vector<1x64xf32> to vector<32x64xf32>
    %6 = arith.addf %3, %5 : vector<32x64xf32>
    %cst_5 = arith.constant 0.000000e+00 : f32
    %7 = vector.broadcast %cst_5 : f32 to vector<32x64xf32>
    %8 = arith.maximumf %6, %7 : vector<32x64xf32>
    %9 = arith.truncf %8 : vector<32x64xf32> to vector<32x64xbf16>
    %c0_6 = arith.constant 0 : index
    %c0_7 = arith.constant 0 : index
    %10 = vector.load %arg4[%c0_6, %c0_7] : memref<64x48xbf16, #tpu.memory_space<vmem>>, vector<64x48xbf16>
    %cst_8 = arith.constant dense<0.000000e+00> : vector<32x48xf32>
    %11 = tpu.matmul %9, %10, %cst_8 {dimension_numbers = #tpu.dot_dimension_numbers<[1], [0], [0], [1], [0, 0, 1, 1], [], []>} : vector<32x64xbf16>, vector<64x48xbf16>, vector<32x48xf32> -> vector<32x48xf32>
    %c0_9 = arith.constant 0 : index
    %c0_10 = arith.constant 0 : index
    %12 = vector.load %arg5[%c0_9, %c0_10] : memref<1x48xf32, #tpu.memory_space<vmem>>, vector<1x48xf32>
    %13 = vector.broadcast %12 : vector<1x48xf32> to vector<32x48xf32>
    %14 = arith.addf %11, %13 : vector<32x48xf32>
    %cst_11 = arith.constant 0.000000e+00 : f32
    %15 = vector.broadcast %cst_11 : f32 to vector<32x48xf32>
    %16 = arith.maximumf %14, %15 : vector<32x48xf32>
    %17 = arith.truncf %16 : vector<32x48xf32> to vector<32x48xbf16>
    %c0_12 = arith.constant 0 : index
    %c0_13 = arith.constant 0 : index
    %18 = vector.load %arg6[%c0_12, %c0_13] : memref<48x8xbf16, #tpu.memory_space<vmem>>, vector<48x8xbf16>
    %cst_14 = arith.constant dense<0.000000e+00> : vector<32x8xf32>
    %19 = tpu.matmul %17, %18, %cst_14 {dimension_numbers = #tpu.dot_dimension_numbers<[1], [0], [0], [1], [0, 0, 1, 1], [], []>} : vector<32x48xbf16>, vector<48x8xbf16>, vector<32x8xf32> -> vector<32x8xf32>
    %c0_15 = arith.constant 0 : index
    %c0_16 = arith.constant 0 : index
    %20 = vector.load %arg7[%c0_15, %c0_16] : memref<1x8xf32, #tpu.memory_space<vmem>>, vector<1x8xf32>
    %21 = vector.broadcast %20 : vector<1x8xf32> to vector<32x8xf32>
    %22 = arith.addf %19, %21 : vector<32x8xf32>
    %c0_17 = arith.constant 0 : index
    %c0_18 = arith.constant 0 : index
    %23 = vector.load %arg8[%c0_17, %c0_18] : memref<32x8xf32, #tpu.memory_space<vmem>>, vector<32x8xf32>
    tpu.vector_store %arg8[%c0_17, %c0_18], %22 {strides = array<i32>} : memref<32x8xf32, #tpu.memory_space<vmem>>, vector<32x8xf32>,
    return
  }
  func.func @transform_0(%arg0: i32) -> (i32, i32) {
    %c0_i32 = arith.constant 0 : i32
    %c0_i32_0 = arith.constant 0 : i32
    return %arg0, %c0_i32 : i32, i32
  }
  func.func @transform_1(%arg0: i32) -> (i32, i32) {
    %c0_i32 = arith.constant 0 : i32
    %c0_i32_0 = arith.constant 0 : i32
    %c0_i32_1 = arith.constant 0 : i32
    return %c0_i32, %c0_i32_0 : i32, i32
  }
  func.func @transform_2(%arg0: i32) -> (i32, i32) {
    %c0_i32 = arith.constant 0 : i32
    %c0_i32_0 = arith.constant 0 : i32
    %c0_i32_1 = arith.constant 0 : i32
    return %c0_i32, %c0_i32_0 : i32, i32
  }
  func.func @transform_3(%arg0: i32) -> (i32, i32) {
    %c0_i32 = arith.constant 0 : i32
    %c0_i32_0 = arith.constant 0 : i32
    %c0_i32_1 = arith.constant 0 : i32
    return %c0_i32, %c0_i32_0 : i32, i32
  }
  func.func @transform_4(%arg0: i32) -> (i32, i32) {
    %c0_i32 = arith.constant 0 : i32
    %c0_i32_0 = arith.constant 0 : i32
    %c0_i32_1 = arith.constant 0 : i32
    return %c0_i32, %c0_i32_0 : i32, i32
  }
  func.func @transform_5(%arg0: i32) -> (i32, i32) {
    %c0_i32 = arith.constant 0 : i32
    %c0_i32_0 = arith.constant 0 : i32
    %c0_i32_1 = arith.constant 0 : i32
    return %c0_i32, %c0_i32_0 : i32, i32
  }
  func.func @transform_6(%arg0: i32) -> (i32, i32) {
    %c0_i32 = arith.constant 0 : i32
    %c0_i32_0 = arith.constant 0 : i32
    %c0_i32_1 = arith.constant 0 : i32
    return %c0_i32, %c0_i32_0 : i32, i32
  }
  func.func @transform_7(%arg0: i32) -> (i32, i32) {
    %c0_i32 = arith.constant 0 : i32
    %c0_i32_0 = arith.constant 0 : i32
    return %arg0, %c0_i32 : i32, i32
  }
}

</mosaic_0001>

<bundles_post_ra>
// kernel: _forward_impl.1
= control target key start
LH: loop header
LB: loop body
LE: loop exit
PB: predicated region body
PF: predicated region fallthrough
CT: control target
= control target key end

     0   :  { %vm56_vm0 = vcmask 261120   ;;  %vm157_vm1 = vcmask 523264   ;;  %vm250_vm2 = vcmask 392192   ;;  %vm306_vm3 = vcmask 64512   ;;  %s528_s0 = inlined_call_operand.vmem [shape: f32[24,32], index: 0, kind: input, shape index: {}]   ;;  %s529_s1 = inlined_call_operand.vmem [shape: bf16[32,64], index: 1, kind: input, shape index: {}]   ;;  %s530_s2 = inlined_call_operand.vmem [shape: f32[1,64], index: 2, kind: input, shape index: {}]   ;;  %s531_s3 = inlined_call_operand.vmem [shape: bf16[64,48], index: 3, kind: input, shape index: {}]   ;;  %s532_s4 = inlined_call_operand.vmem [shape: f32[1,48], index: 4, kind: input, shape index: {}]   ;;  %s533_s5 = inlined_call_operand.vmem [shape: bf16[48,8], index: 5, kind: input, shape index: {}]   ;;  %s534_s6 = inlined_call_operand.vmem [shape: f32[1,8], index: 6, kind: input, shape index: {}]   ;;  %s535_s7 = inlined_call_operand.vmem [shape: f32[24,8], index: 7, kind: output, shape index: {}]  }
   0x1   :  { %v422_v0 = vld [vmem:[%s529_s1] sm:$0xff]   ;;  %v423_v1 = vld [vmem:[%s529_s1 + $0x8] sm:$0xff]   ;;  %v29_v4 = vld [vmem:[%s528_s0 + $0x10] sm:$0xff] }
   0x2   :  { %392 = vmatprep.subr.bf16.mxu0 %v422_v0  ;;  %v27_v2 = vld [vmem:[%s528_s0] sm:$0xff]  ;;  %v28_v3 = vld [vmem:[%s528_s0 + $0x8] sm:$0xff]  ;;  %v30_v6 = vld [vmem:[%s528_s0 + $0x18] sm:$0xff] }
   0x3   :  { %393 = vmatpush3.bf16.msra.mxu0 %v422_v0  ;;  %v31_v5 = vpack.c.bf16 %v28_v3, %v27_v2  ;;  %v424_v7 = vld [vmem:[%s531_s3] sm:$0xff]   ;;  %v425_v8 = vld [vmem:[%s531_s3 + $0x8] sm:$0xff]   ;;  %v32_v9 = vpack.c.bf16 %v30_v6, %v29_v4  ;;  %v426_v10 = vld [vmem:[%s531_s3 + $0x10] sm:$0xff]  }
   0x4   :  { %394 = vmatprep.subr.bf16.mxu0 %v423_v1  ;;  %400 = vmatprep.subr.bf16.mxu1 %v424_v7  ;;  %v427_v11 = vld [vmem:[%s531_s3 + $0x18] sm:$0xff]   ;;  %v428_v12 = vld [vmem:[%s533_s5] sm:$0xff]   ;;  %v429_v28 = vld [vmem:[%s533_s5 + $0x8] sm:$0xff]  }
   0x5   :  { %396 = vmatprep.mubr.msk.bf16.mxu0 %vm56_vm0, %v31_v5  ;;  %401 = vmatpush3.bf16.msra.mxu1 %v424_v7  ;;  %v359_v13 = vld [vmem:[%s530_s2] ss:$0 sm:$0xff]  ;;  %v430_v29 = vld [vmem:[%s533_s5 + $0x10] sm:$0xff]  }
   0x6   :  { %402 = vmatprep.subr.bf16.mxu1 %v425_v8  ;;  %v364_v30 = vld [vmem:[%s532_s4] ss:$0 sm:$0xff] }
   0x7   :  { %395 = vmatpush3.bf16.msra.mxu0 %v423_v1  ;;  %v371_v45 = vld [vmem:[%s534_s6] ss:$0 sm:$0xff] }
   0x8   :  { %412 = vmatprep.subr.bf16.mxu0 %v428_v12 }
   0x9   :  { %403 = vmatpush3.bf16.msra.mxu1 %v425_v8 }
   0xa   :  { %397 = vmatmul.mubr.msk.bf16.vlgmr.msra.gmra.mrb[0].mxu0 %vm56_vm0, %v32_v9  ;;  %404 = vmatprep.subr.bf16.mxu1 %v426_v10 }
   0xb   :  { %413 = vmatpush3.bf16.msra.mxu0 %v428_v12 }
   0xc   :  { %414 = vmatprep.subr.bf16.mxu0 %v429_v28 }
   0xd   :  { %405 = vmatpush3.bf16.msra.mxu1 %v426_v10 }
   0xe   :  { %406 = vmatprep.subr.bf16.mxu1 %v427_v11 }
   0xf   :  { %415 = vmatpush3.bf16.msra.mxu0 %v429_v28 }
  0x10   :  { %416 = vmatprep.subr.bf16.mxu0 %v430_v29 }
  0x11   :  { %407 = vmatpush3.bf16.msra.mxu1 %v427_v11 }
  0x13   :  { %417 = vmatpush3.bf16.msra.mxu0 %v430_v29 }
  0xdd   :  { %v398_v14 = vpop.f32.mrb[0].mxu0 }
  0xde   :  { %v106_v15 = vadd.f32 %v398_v14, %v359_v13  ;;  %v97_v16 = vpop.f32.mrb[1].mxu0 }
  0xdf   :  { %v98_v17 = vadd.f32 %v359_v13, %v97_v16  ;;  %v399_v18 = vpop.f32.mrb[2].mxu0 }
  0xe0   :  { %v109_v19 = vadd.f32 %v399_v18, %v359_v13  ;;  %v100_v20 = vpop.f32.mrb[3].mxu0  ;;  %v114_v22 = vmax.f32 %v106_v15, 0.0 }
  0xe1   :  { %v101_v21 = vadd.f32 %v359_v13, %v100_v20  ;;  %v112_v24 = vmax.f32 %v98_v17, 0.0 }
  0xe2   :  { %v115_v23 = vmax.f32 %v109_v19, 0.0 }
  0xe3   :  { %v113_v25 = vmax.f32 %v101_v21, 0.0 }
  0xe4   :  { %v117_v26 = vpack.c.bf16 %v115_v23, %v114_v22 }
  0xe5   :  { %v116_v27 = vpack.c.bf16 %v113_v25, %v112_v24 }
  0xe7   :  { %408 = vmatprep.mubr.msk.bf16.mxu1 %vm157_vm1, %v116_v27 }
  0xe8   :  { %409 = vmatmul.mubr.msk.bf16.vlgmr.msra.gmra.mrb[0].mxu1 %vm157_vm1, %v117_v26 }
 0x1bb   :  { %v410_v31 = vpop.f32.mrb[0].mxu1 }
 0x1bc   :  { %v207_v32 = vadd.f32 %v410_v31, %v364_v30  ;;  %v198_v33 = vpop.f32.mrb[1].mxu1 }
 0x1bd   :  { %v199_v34 = vadd.f32 %v364_v30, %v198_v33  ;;  %v411_v35 = vpop.f32.mrb[2].mxu1 }
 0x1be   :  { %v210_v36 = vadd.f32 %v411_v35, %v364_v30  ;;  %v201_v37 = vpop.f32.mrb[3].mxu1  ;;  %v215_v39 = vmax.f32 %v207_v32, 0.0 }
 0x1bf   :  { %v202_v38 = vadd.f32 %v364_v30, %v201_v37  ;;  %v213_v41 = vmax.f32 %v199_v34, 0.0 }
 0x1c0   :  { %v216_v40 = vmax.f32 %v210_v36, 0.0 }
 0x1c1   :  { %v214_v42 = vmax.f32 %v202_v38, 0.0 }
 0x1c2   :  { %v218_v43 = vpack.c.bf16 %v216_v40, %v215_v39 }
 0x1c3   :  { %v217_v44 = vpack.c.bf16 %v214_v42, %v213_v41 }
 0x1c5   :  { %418 = vmatprep.mubr.msk.bf16.mxu0 %vm250_vm2, %v217_v44 }
 0x1c6   :  { %419 = vmatmul.mubr.msk.bf16.vlgmr.msra.gmra.mrb[4].mxu0 %vm250_vm2, %v218_v43 }
 0x299   :  { %v420_v46 = vpop.f32.mrb[4].mxu0 }
 0x29a   :  { %v300_v47 = vadd.f32 %v420_v46, %v371_v45  ;;  %v291_v48 = vpop.f32.mrb[5].mxu0 }
 0x29b   :  { %v292_v49 = vadd.f32 %v371_v45, %v291_v48  ;;  %v421_v50 = vpop.f32.mrb[6].mxu0 }
 0x29c   :  { %309 = vst.msk [vmem:[#allocation2 + $0x10] sm:$0xff] %vm306_vm3, %v300_v47  ;;  %v294_v51 = vpop.f32.mrb[7].mxu0 }
 0x29d   :  { %307 = vst.msk [vmem:[#allocation2] sm:$0xff] %vm306_vm3, %v292_v49  ;;  %v295_v52 = vadd.f32 %v371_v45, %v294_v51 }
 0x29f   :  { %308 = vst.msk [vmem:[#allocation2 + $0x8] sm:$0xff] %vm306_vm3, %v295_v52 }
 0x2a3   :  { %v348_v53 = vld [vmem:[#allocation2 + $0x10] sm:$0xff] }
 0x2a4   :  { %349 = vst [vmem:[%s535_s7 + $0x10] sm:$0xff] %v348_v53  ;;  %v344_v54 = vld [vmem:[#allocation2] sm:$0xff] }
 0x2a5   :  { %345 = vst [vmem:[%s535_s7] sm:$0xff] %v344_v54 }
 0x2a6   :  { %v346_v55 = vld [vmem:[#allocation2 + $0x8] sm:$0xff] }
 0x2a7   :  { %347 = vst [vmem:[%s535_s7 + $0x8] sm:$0xff] %v346_v55 }

</bundles_post_ra>
